<compile_context>
chip_gen: v6e
topology: v6e:2x2x1
jax: 0.10.0
libtpu: 0.0.40
codegen_flags: <defaults>
</compile_context>

<pallas_src>
import functools

import jax
import jax.numpy as jnp
from jax.experimental import pallas as pl
from jax.experimental.pallas import tpu as pltpu


def style_block_kernel(alpha_ref, mod_ref, w_ref, b_ref, out_ref, *, cast_bf16):
    # Scalar first (SMEM path), then MXU matmul (f32 accumulate), then the
    # fused bias + rezero epilogue on the VPU, cast only at the final store.
    alpha = alpha_ref[0]                                   # re_alpha scalar (SMEM)
    a = mod_ref[...]
    w = w_ref[...]
    if cast_bf16:                                          # optional single bf16 MXU pass
        a = a.astype(jnp.bfloat16)
        w = w.astype(jnp.bfloat16)
    acc = jnp.dot(a, w, preferred_element_type=jnp.float32)   # (tb, S) f32 on MXU
    acc = acc + b_ref[...]                                     # (tb,S) + (1,S) broadcast
    out_ref[...] = (1.0 + alpha * acc).astype(out_ref.dtype)


def _round_up(x, m):
    return ((x + m - 1) // m) * m


def style_block(mod, weight_t, bias, re_alpha, *, block_b=8192,
                out_dtype=None, cast_bf16=False):
    """StyleBlock forward: 1 + re_alpha * (mod @ weight_t + bias).

    mod:      (B, mod_features)              f32
    weight_t: (mod_features, style_features) f32  (== torch weight.T)
    bias:     (1, style_features)            f32
    re_alpha: (1,)                           f32 learnable rezero scalar
    out_dtype: output dtype (default mod.dtype); bf16 halves output HBM traffic.
    cast_bf16: cast matmul operands to bf16 inside the kernel (f32 accumulate).
    """
    B, K = mod.shape
    S = weight_t.shape[1]
    out_dtype = mod.dtype if out_dtype is None else out_dtype

    # Batch tile: cover B in one step when small, otherwise block_b rows.
    # Multiple of 8 sublanes; ragged boundary blocks handled by Pallas.
    tb = min(block_b, _round_up(B, 8))
    tb = max(8, (tb // 8) * 8)

    grid = (pl.cdiv(B, tb),)

    # Scoped-VMEM budget: double-buffered mod + out tiles, resident weight/bias,
    # plus headroom; capped well under v7x's 64 MiB physical VMEM.
    in_bytes = jnp.dtype(mod.dtype).itemsize
    out_bytes = jnp.dtype(out_dtype).itemsize
    vmem_need = (2 * tb * K * in_bytes          # double-buffered mod tile
                 + 2 * tb * S * out_bytes       # double-buffered out tile
                 + K * S * 4 + S * 4)           # resident weight_t + bias
    vmem_limit = int(min(max(vmem_need + (4 << 20), 16 << 20), 48 << 20))

    kernel = functools.partial(style_block_kernel, cast_bf16=cast_bf16)

    return pl.pallas_call(
        kernel,
        out_shape=jax.ShapeDtypeStruct((B, S), out_dtype),
        grid=grid,
        in_specs=[
            pl.BlockSpec(memory_space=pltpu.SMEM),          # re_alpha scalar
            pl.BlockSpec((tb, K), lambda i: (i, 0)),         # mod batch tile (ragged OK)
            pl.BlockSpec((K, S), lambda i: (0, 0)),          # weight_t (VMEM-resident)
            pl.BlockSpec((1, S), lambda i: (0, 0)),          # bias     (VMEM-resident)
        ],
        out_specs=pl.BlockSpec((tb, S), lambda i: (i, 0)),   # lane-dense (S=128)
        compiler_params=pltpu.CompilerParams(
            dimension_semantics=("parallel",),               # megacore on v7x
            vmem_limit_bytes=vmem_limit),
    )(re_alpha, mod, weight_t, bias)


if __name__ == "__main__":
    # Shapes consistent with the module: mod_features=32, style_features=128.
    B, MOD_F, STYLE_F = 20, 32, 128

    key = jax.random.PRNGKey(0)
    k_mod, k_w, k_b, k_mod2 = jax.random.split(key, 4)

    mod = jax.random.normal(k_mod, (B, MOD_F), dtype=jnp.float32)

    # Synthetic nn.Linear(mod_features, style_features) params; torch stores
    # weight as (style, mod) — we keep it pre-transposed.
    weight_t = jax.random.normal(k_w, (MOD_F, STYLE_F), dtype=jnp.float32) * 0.05
    bias = jax.random.normal(k_b, (1, STYLE_F), dtype=jnp.float32) * 0.05

    # rezero=True -> re_alpha initialized to 0 in torch; nonzero here so the
    # affine path is actually exercised by the tolerance check.
    re_alpha = jnp.array([0.25], dtype=jnp.float32)

    # 1) Native small-B case: single grid step, no pad, no slice.
    out = jax.block_until_ready(style_block(mod, weight_t, bias, re_alpha))
    ref = 1.0 + re_alpha[0] * (mod @ weight_t + bias)
    assert out.shape == (B, STYLE_F)
    assert jnp.allclose(out, ref, atol=1e-5, rtol=1e-5), "mismatch vs reference (small B)"

    # 2) Multi-step ragged grid: B2 not a multiple of the tile, 2+ grid steps.
    B2 = 1000
    mod2 = jax.random.normal(k_mod2, (B2, MOD_F), dtype=jnp.float32)
    out2 = jax.block_until_ready(
        style_block(mod2, weight_t, bias, re_alpha, block_b=256))
    ref2 = 1.0 + re_alpha[0] * (mod2 @ weight_t + bias)
    assert out2.shape == (B2, STYLE_F)
    assert jnp.allclose(out2, ref2, atol=1e-5, rtol=1e-5), "mismatch vs reference (ragged grid)"

    print("KERNEL_OK")
</pallas_src>

<mosaic_0001>
module attributes {stable_mosaic.version = 11 : i64} {
  func.func @style_block_kernel(%arg0: i32, %arg1: memref<1xf32, #tpu.memory_space<smem>>, %arg2: memref<24x32xf32, #tpu.memory_space<vmem>>, %arg3: memref<32x128xf32, #tpu.memory_space<vmem>>, %arg4: memref<1x128xf32, #tpu.memory_space<vmem>>, %arg5: memref<24x128xf32, #tpu.memory_space<vmem>>) attributes {dimension_semantics = [#tpu.dimension_semantics<parallel>], iteration_bounds = array<i64: 1>, scalar_prefetch = 0 : i64, scratch_operands = 0 : i64, tpu.core_type = #tpu.core_type<tc>, window_params = [{transform_indices = @transform_0, window_bounds = array<i64: 1>}, {transform_indices = @transform_1, window_bounds = array<i64: 24, 32>}, {pipeline_mode = #tpu.pipeline_mode<synchronous>, transform_indices = @transform_2, window_bounds = array<i64: 32, 128>}, {pipeline_mode = #tpu.pipeline_mode<synchronous>, transform_indices = @transform_3, window_bounds = array<i64: 1, 128>}, {transform_indices = @transform_4, window_bounds = array<i64: 24, 128>}]} {
    %c0 = arith.constant 0 : index
    %0 = memref.load %arg1[%c0] : memref<1xf32, #tpu.memory_space<smem>>
    %c0_0 = arith.constant 0 : index
    %c0_1 = arith.constant 0 : index
    %1 = vector.load %arg2[%c0_0, %c0_1] : memref<24x32xf32, #tpu.memory_space<vmem>>, vector<24x32xf32>
    %c0_2 = arith.constant 0 : index
    %c0_3 = arith.constant 0 : index
    %2 = vector.load %arg3[%c0_2, %c0_3] : memref<32x128xf32, #tpu.memory_space<vmem>>, vector<32x128xf32>
    %cst = arith.constant dense<0.000000e+00> : vector<24x128xf32>
    %3 = tpu.matmul %1, %2, %cst {dimension_numbers = #tpu.dot_dimension_numbers<[1], [0], [0], [1], [0, 0, 1, 1], [], []>} : vector<24x32xf32>, vector<32x128xf32>, vector<24x128xf32> -> vector<24x128xf32>
    %c0_4 = arith.constant 0 : index
    %c0_5 = arith.constant 0 : index
    %4 = vector.load %arg4[%c0_4, %c0_5] : memref<1x128xf32, #tpu.memory_space<vmem>>, vector<1x128xf32>
    %5 = vector.broadcast %4 : vector<1x128xf32> to vector<24x128xf32>
    %6 = arith.addf %3, %5 : vector<24x128xf32>
    %7 = vector.broadcast %0 : f32 to vector<24x128xf32>
    %8 = arith.mulf %7, %6 : vector<24x128xf32>
    %cst_6 = arith.constant 1.000000e+00 : f32
    %9 = vector.broadcast %cst_6 : f32 to vector<24x128xf32>
    %10 = arith.addf %9, %8 : vector<24x128xf32>
    %c0_7 = arith.constant 0 : index
    %c0_8 = arith.constant 0 : index
    %11 = vector.load %arg5[%c0_7, %c0_8] : memref<24x128xf32, #tpu.memory_space<vmem>>, vector<24x128xf32>
    tpu.vector_store %arg5[%c0_7, %c0_8], %10 {strides = array<i32>} : memref<24x128xf32, #tpu.memory_space<vmem>>, vector<24x128xf32>,
    return
  }
  func.func @transform_0(%arg0: i32) -> i32 {
    %c0_i32 = arith.constant 0 : i32
    %c0_i32_0 = arith.constant 0 : i32
    return %c0_i32 : i32
  }
  func.func @transform_1(%arg0: i32) -> (i32, i32) {
    %c0_i32 = arith.constant 0 : i32
    %c0_i32_0 = arith.constant 0 : i32
    return %arg0, %c0_i32 : i32, i32
  }
  func.func @transform_2(%arg0: i32) -> (i32, i32) {
    %c0_i32 = arith.constant 0 : i32
    %c0_i32_0 = arith.constant 0 : i32
    %c0_i32_1 = arith.constant 0 : i32
    return %c0_i32, %c0_i32_0 : i32, i32
  }
  func.func @transform_3(%arg0: i32) -> (i32, i32) {
    %c0_i32 = arith.constant 0 : i32
    %c0_i32_0 = arith.constant 0 : i32
    %c0_i32_1 = arith.constant 0 : i32
    return %c0_i32, %c0_i32_0 : i32, i32
  }
  func.func @transform_4(%arg0: i32) -> (i32, i32) {
    %c0_i32 = arith.constant 0 : i32
    %c0_i32_0 = arith.constant 0 : i32
    return %arg0, %c0_i32 : i32, i32
  }
}

</mosaic_0001>

<bundles_post_ra>
// kernel: tpu_custom_call.1
= control target key start
LH: loop header
LB: loop body
LE: loop exit
PB: predicated region body
PF: predicated region fallthrough
CT: control target
= control target key end

     0   :  { %10 = vsyncpa [#allocation4], 0  ;;  %s348_s0 = inlined_call_operand.<no memory space> [shape: f32[1], index: 0, kind: input, shape index: {}]   ;;  %s349_s1 = inlined_call_operand.hbm [shape: f32[20,32], index: 1, kind: input, shape index: {}]   ;;  %s350_s2 = inlined_call_operand.hbm [shape: f32[32,128], index: 2, kind: input, shape index: {}]   ;;  %s351_s3 = inlined_call_operand.vmem [shape: f32[1,128], index: 3, kind: input, shape index: {}]   ;;  %s352_s4 = inlined_call_operand.hbm [shape: f32[20,128], index: 4, kind: output, shape index: {}]  }
   0x1   :  { %11 = vsyncpa [#allocation7], 0 }
   0x2   :  { %12 = vsyncpa [#allocation5], 0  ;;  %s289_s15 = smov [#allocation3]  }
   0x3   :  { %s20_s16 = sshll.u32 %s289_s15, 4  ;;  %s21_s16 = int_to_ptr.vmem [resolvable:$true] %s20_s16 }
   0x4   :  { %s231_s17 = scalar_lea.vmem %s21_s16, 384  ;;  %p236_p1 = scmp.lt.s32.totalorder %s21_s16, %s21_s16 }
   0x5   :  { %p232_p0 = scmp.ne.s32.totalorder %s21_s16, %s231_s17  ;;  %p237_p2 = scmp.lt.s32.totalorder %s231_s17, %s231_s17 }
   0x7   :  { %p238_p3 = por %p237_p2, %p236_p1 }
   0x9   :  { %p239_p4 = pnand %p238_p3, %p232_p0 }
   0xb   :  { %242 = shalt.err (!%p239_p4)
}
   0xc   :  { %s290_s18 = smov 128   ;;  %s291_s19 = smov 8  }
   0xd   :  { %26 = dma.hbm_to_vmem [thread:$0]  %s349_s1, 384, %s21_s16, [#allocation4], %s290_s18, %s290_s18, %s291_s19  }
   0xe   :  { %s292_s22 = smov [#allocation6]  }
   0xf   :  { %s32_s23 = sshll.u32 %s292_s22, 4  ;;  %s33_s23 = int_to_ptr.vmem [resolvable:$true] %s32_s23 }
  0x10   :  { %s251_s24 = scalar_lea.vmem %s33_s23, 512  ;;  %p256_p6 = scmp.lt.s32.totalorder %s33_s23, %s33_s23 }
  0x11   :  { %p252_p5 = scmp.ne.s32.totalorder %s33_s23, %s251_s24  ;;  %p257_p7 = scmp.lt.s32.totalorder %s251_s24, %s251_s24 }
  0x13   :  { %p258_p8 = por %p257_p7, %p256_p6 }
  0x15   :  { %p259_p9 = pnand %p258_p8, %p252_p5 }
  0x17   :  { %262 = shalt.err (!%p259_p9)
}
  0x18   :  { %38 = dma.hbm_to_vmem [thread:$0]  %s350_s2, 512, %s33_s23, [#allocation7], %s290_s18, %s290_s18, %s291_s19  }
  0x19   :  { %283 = dma.done.wait [#allocation4], 384  }
  0x1a   :  { %284 = vsyncadd [#allocation4], 4294966912 }
  0x1b   :  { %285 = dma.done.wait [#allocation7], 512  }
  0x1c   :  { %286 = vsyncadd [#allocation7], 4294966784  ;;  %v293_v0 = vmov 0.0   ;;  %vm294_vm0 = vmmov 0   ;;  %v54_v1 = vld [vmem:[#allocation6 + $0x18] sm:$0xff]  ;;  %v53_v2 = vld [vmem:[#allocation6 + $0x10] sm:$0xff]  ;;  %v152_v10 = vstv %s348_s0 }
  0x1d   :  { %208 = vmatprep.subr.mxu1 %v293_v0  ;;  %191 = vmatprep.subr.mxu0 %v293_v0  ;;  %v52_v3 = vld [vmem:[#allocation6 + $0x8] sm:$0xff]  ;;  %v51_v4 = vld [vmem:[#allocation6] sm:$0xff]  ;;  %v49_v5 = vld [vmem:[#allocation3 + $0x8] sm:$0xff]  ;;  %vm62_vm1 = vcmask 261120   ;;  %s295_s29 = smov [#allocation8]  }
  0x1e   :  { %202 = vmatprep.mubr.msk.f32.mxu1 %vm294_vm0, %v293_v0  ;;  %199 = vmatprep.mubr.msk.f32.mxu0 %vm294_vm0, %v293_v0  ;;  %v48_v6 = vld [vmem:[#allocation3] sm:$0xff]  ;;  %v50_v7 = vld [vmem:[#allocation3 + $0x10] sm:$0xff]  ;;  %s167_s30 = sshll.u32 %s295_s29, 4  ;;  %s168_s30 = int_to_ptr.vmem [resolvable:$true] %s167_s30 }
  0x1f   :  { %212 = vmatpush3.msra.mxu1 %v54_v1  ;;  %192 = vmatpush3.msra.mxu0 %v54_v1  ;;  %v180_v8 = vld [vmem:[%s351_s3] ss:$0 sm:$0xff]  ;;  %s263_s0 = scalar_lea.vmem %s168_s30, 384  ;;  %p268_p11 = scmp.lt.s32.totalorder %s168_s30, %s168_s30 }
  0x20   :  { %209 = vmatprep.subr.mxu1 %v293_v0  ;;  %193 = vmatprep.subr.mxu0 %v293_v0  ;;  %p264_p10 = scmp.ne.s32.totalorder %s168_s30, %s263_s0  ;;  %p269_p12 = scmp.lt.s32.totalorder %s263_s0, %s263_s0 }
  0x21   :  { %213 = vmatpush3.msra.mxu1 %v53_v2  ;;  %194 = vmatpush3.msra.mxu0 %v53_v2 }
  0x22   :  { %210 = vmatprep.subr.mxu1 %v293_v0  ;;  %195 = vmatprep.subr.mxu0 %v293_v0  ;;  %p270_p13 = por %p269_p12, %p268_p11 }
  0x23   :  { %214 = vmatpush3.msra.mxu1 %v52_v3  ;;  %196 = vmatpush3.msra.mxu0 %v52_v3 }
  0x24   :  { %211 = vmatprep.subr.mxu1 %v293_v0  ;;  %197 = vmatprep.subr.mxu0 %v293_v0  ;;  %p271_p0 = pnand %p270_p13, %p264_p10 }
  0x25   :  { %215 = vmatpush3.msra.mxu1 %v51_v4  ;;  %198 = vmatpush3.msra.mxu0 %v51_v4 }
  0x26   :  { %203 = vmatmul.mubr.msk.f32.vlgmr.msra.gmra.mxu1 %vm62_vm1, %v49_v5  ;;  %200 = vmatmul.mubr.msk.f32.vlgmr.msra.gmra.mxu0 %vm62_vm1, %v48_v6 }
  0x27   :  { %205 = vmatprep.mubr.msk.f32.mxu1 %vm294_vm0, %v293_v0 }
  0x2a   :  { %206 = vmatmul.mubr.msk.f32.gmra.mxu1 %vm62_vm1, %v50_v7 }
  0xe6   :  { %v143_v9 = vpop.f32.mrf.mxu1  ;;  %v138_v11 = vpop.f32.mrf.mxu0 }
  0xe7   :  { %v144_v12 = vadd.f32 %v180_v8, %v143_v9  ;;  %v139_v13 = vadd.f32 %v180_v8, %v138_v11 }
  0xe8   :  { %v204_v14 = vpop.f32.mrf.mxu1  ;;  %v201_v15 = vpop.f32.mrf.mxu0 }
  0xe9   :  { %v154_v16 = vmul.f32 %v152_v10, %v144_v12  ;;  %v153_v17 = vmul.f32 %v152_v10, %v139_v13 }
  0xea   :  { %v148_v18 = vpop.f32.mrf.mxu1 }
  0xeb   :  { %v157_v19 = vadd.f32 1.0, %v154_v16  ;;  %v156_v20 = vadd.f32 1.0, %v153_v17  ;;  %v149_v21 = vadd.f32 %v180_v8, %v148_v18 }
  0xec   :  { %v207_v22 = vpop.f32.mrf.mxu1 }
  0xed   :  { %160 = vst [vmem:[#allocation8 + $0x8] sm:$0xff] %v157_v19  ;;  %159 = vst [vmem:[#allocation8] sm:$0xff] %v156_v20  ;;  %v155_v23 = vmul.f32 %v152_v10, %v149_v21 }
  0xef   :  { %v158_v24 = vadd.f32 1.0, %v155_v23 }
  0xf1   :  { %161 = vst [vmem:[#allocation8 + $0x10] sm:$0xff] %v158_v24 }
  0xf2   :  { %274 = shalt.err (!%p271_p0)
}
  0xf3   :  { %173 = dma.vmem_to_hbm [thread:$0]  %s168_s30, 384, %s352_s4, [#allocation5], %s290_s18, %s290_s18, %s291_s19  }
  0xf4   :  { %287 = dma.done.wait [#allocation5], 384  }
  0xf5   :  { %288 = vsyncadd [#allocation5], 4294966912 }
  0xf6   :  { %177 = vsyncpa [#allocation4], 1 }
  0xf7   :  { %178 = vsyncpa [#allocation7], 1 }
  0xf8   :  { %179 = vsyncpa [#allocation5], 1 }

</bundles_post_ra>
